<compile_context>
chip_gen: v7x
topology: tpu7x:2x2x1
jax: 0.10.0
libtpu: 0.0.40
codegen_flags: <defaults>
</compile_context>

<pallas_src>
import math

import jax
import jax.numpy as jnp
from jax.experimental import pallas as pl
from jax.experimental.pallas import tpu as pltpu


# ----------------------------------------------------------------------------
# Fused Pallas kernel: both branches of AdvSKM_Disc in one pass
# ----------------------------------------------------------------------------
def _advskm_kernel(x_ref, w1_ref, w2_ref, w3_ref, w4_ref, vec1_ref, vec2_ref,
                   out_ref):
    """x: (B, D) f32; w1..w4 packed bf16; vec1 (3, 2*hid), vec2 (3, hid) f32.

    vec1 rows: [layer-1 bias, BN1 gamma, BN1 beta]   (width 2*hid)
    vec2 rows: [layer-3 bias, BN2 gamma, BN2 beta]   (width hid)
    out: (B, hid) f32 == torch.cat((out_cos, out_rel), dim=1)
    """
    x = x_ref[...]
    hid2 = w2_ref.shape[1]            # 2 * hid  (both branches side by side)
    hid = hid2 // 2

    # Static row views of the packed bias/BN slabs (zero-cost slices).
    b1, g1, be1 = vec1_ref[0:1, :], vec1_ref[1:2, :], vec1_ref[2:3, :]
    b3, g2, be2 = vec2_ref[0:1, :], vec2_ref[1:2, :], vec2_ref[2:3, :]

    # Lane masks for the cos-vs-ReLU split, built once (first half = branch_1).
    col = jax.lax.broadcasted_iota(jnp.int32, (1, hid2), 1)
    cos_mask1 = col < hid                         # (1, 2*hid)
    cos_mask2 = col[:, :hid] < (hid // 2)         # (1, hid)

    def mxu(a, w_ref):
        # bf16 operands, f32 accumulation on the MXU.
        return jnp.dot(a.astype(jnp.bfloat16), w_ref[...],
                       preferred_element_type=jnp.float32)

    def bn_train(h, gamma, beta):
        # nn.BatchNorm1d, training mode: biased batch stats, eps = 1e-5,
        # folded into one scale/shift.
        mean = jnp.mean(h, axis=0, keepdims=True)
        d = h - mean
        var = jnp.mean(d * d, axis=0, keepdims=True)
        return d * (gamma * jax.lax.rsqrt(var + 1e-5)) + beta

    def mixed_act(h, cos_mask):
        return jnp.where(cos_mask, jnp.cos(h), jnp.maximum(h, 0.0))

    # ---- first block: Linear -> Linear -> BN -> {cos | relu} ----------------
    h = mxu(x, w1_ref) + b1                       # (B, 2*hid)
    h = mxu(h, w2_ref)                            # layer-2 bias dead under training BN
    h = mixed_act(bn_train(h, g1, be1), cos_mask1)

    # ---- second block: Linear -> Linear -> BN -> {cos | relu} ---------------
    h = mxu(h, w3_ref) + b3                       # (B, hid)
    h = mxu(h, w4_ref)                            # layer-4 bias dead under training BN
    out_ref[...] = mixed_act(bn_train(h, g2, be2), cos_mask2)


# ----------------------------------------------------------------------------
# pallas_call wrapper: no grid, whole-array VMEM blocks (working set << VMEM)
# ----------------------------------------------------------------------------
def _fused_call(x_flat, pk):
    b = x_flat.shape[0]
    out_dim = pk["w4"].shape[1]
    args = (x_flat, pk["w1"], pk["w2"], pk["w3"], pk["w4"], pk["vec1"], pk["vec2"])
    return pl.pallas_call(
        _advskm_kernel,
        in_specs=[pl.BlockSpec(memory_space=pltpu.MemorySpace.VMEM)
                  for _ in args],
        out_specs=pl.BlockSpec(memory_space=pltpu.MemorySpace.VMEM),
        out_shape=jax.ShapeDtypeStruct((b, out_dim), jnp.float32),
    )(*args)


# ----------------------------------------------------------------------------
# Parameters: PyTorch-style init, then pack ONCE into the fused layout
# ----------------------------------------------------------------------------
def _linear_init(key, fan_in, fan_out):
    kw, kb = jax.random.split(key)
    bound = 1.0 / math.sqrt(fan_in)
    w = jax.random.uniform(kw, (fan_out, fan_in), jnp.float32, -bound, bound)
    b = jax.random.uniform(kb, (fan_out,), jnp.float32, -bound, bound)
    return w, b


def init_params(key, input_dim, hid=64):
    """Raw per-layer params mirroring AdvSKM_Disc.__init__ (branch_1 / branch_2)."""
    kb1, kb2 = jax.random.split(key)
    p = {}
    for pre, kbr in (("b1", kb1), ("b2", kb2)):
        k0, k1, k2, k3 = jax.random.split(kbr, 4)
        p[f"{pre}_w0"], p[f"{pre}_b0"] = _linear_init(k0, input_dim, hid)
        p[f"{pre}_w1"], p[f"{pre}_b1"] = _linear_init(k1, hid, hid)
        p[f"{pre}_w2"], p[f"{pre}_b2"] = _linear_init(k2, hid, hid // 2)
        p[f"{pre}_w3"], p[f"{pre}_b3"] = _linear_init(k3, hid // 2, hid // 2)
        p[f"{pre}_g0"] = jnp.ones((hid,), jnp.float32)        # BatchNorm1d(hid)
        p[f"{pre}_be0"] = jnp.zeros((hid,), jnp.float32)
        p[f"{pre}_g1"] = jnp.ones((hid // 2,), jnp.float32)   # BatchNorm1d(hid//2)
        p[f"{pre}_be1"] = jnp.zeros((hid // 2,), jnp.float32)
    return p


def pack_params(p):
    """One-time packing into the fused, lane-dense kernel layout.

    * Weights -> bf16 (MXU operands), layer-2/4 biases dropped (dead under
      training-mode BN), remaining bias/BN vectors stacked into two f32 slabs.
    """
    def concat_cols(wa, wb):                       # (oa,i),(ob,i) -> (i, oa+ob)
        return jnp.concatenate([wa.T, wb.T], axis=1).astype(jnp.bfloat16)

    def block_diag_t(wa, wb):                      # block-diag of transposed weights
        oa, ia = wa.shape
        ob, ib = wb.shape
        m = jnp.zeros((ia + ib, oa + ob), jnp.float32)
        m = m.at[:ia, :oa].set(wa.T)
        m = m.at[ia:, oa:].set(wb.T)
        return m.astype(jnp.bfloat16)

    def slab(*pairs):                              # stack concat'd rows -> (n, width)
        return jnp.stack(
            [jnp.concatenate([a, b]) for a, b in pairs]).astype(jnp.float32)

    return dict(
        w1=concat_cols(p["b1_w0"], p["b2_w0"]),
        w2=block_diag_t(p["b1_w1"], p["b2_w1"]),
        w3=block_diag_t(p["b1_w2"], p["b2_w2"]),
        w4=block_diag_t(p["b1_w3"], p["b2_w3"]),
        vec1=slab((p["b1_b0"], p["b2_b0"]),        # layer-1 bias
                  (p["b1_g0"], p["b2_g0"]),        # BN1 gamma
                  (p["b1_be0"], p["b2_be0"])),     # BN1 beta        -> (3, 2*hid)
        vec2=slab((p["b1_b2"], p["b2_b2"]),        # layer-3 bias
                  (p["b1_g1"], p["b2_g1"]),        # BN2 gamma
                  (p["b1_be1"], p["b2_be1"])),     # BN2 beta        -> (3, hid)
    )


# ----------------------------------------------------------------------------
# AdvSKM_Disc.forward
# ----------------------------------------------------------------------------
def advskm_disc_forward(x, packed):
    """x: (B, channel, num_nodes) -> (B, hid) == cat(branch_1, branch_2)."""
    # Keep the wrapper a pure view: caller should pass contiguous float32 so the
    # reshape/astype does not materialize an extra copy in front of the kernel.
    x_flat = x.reshape(x.shape[0], -1).astype(jnp.float32)   # input.view(B, -1)
    return _fused_call(x_flat, packed)


# ----------------------------------------------------------------------------
# Pure-JAX reference mirroring the PyTorch math (raw, unpacked params).
# weight_dtype=bf16 reproduces the kernel's MXU precision contract exactly.
# ----------------------------------------------------------------------------
def advskm_disc_ref(x, p, weight_dtype=jnp.float32):
    xf = x.reshape(x.shape[0], -1).astype(jnp.float32)

    def mm(a, w):
        return jnp.dot(a.astype(weight_dtype), w.T.astype(weight_dtype),
                       preferred_element_type=jnp.float32)

    def bn(h, g, b):
        mean = jnp.mean(h, axis=0, keepdims=True)
        var = jnp.mean((h - mean) ** 2, axis=0, keepdims=True)
        return (h - mean) / jnp.sqrt(var + 1e-5) * g[None] + b[None]

    def branch(pre, act):
        h = mm(xf, p[f"{pre}_w0"]) + p[f"{pre}_b0"]
        h = mm(h, p[f"{pre}_w1"]) + p[f"{pre}_b1"]
        h = act(bn(h, p[f"{pre}_g0"], p[f"{pre}_be0"]))
        h = mm(h, p[f"{pre}_w2"]) + p[f"{pre}_b2"]
        h = mm(h, p[f"{pre}_w3"]) + p[f"{pre}_b3"]
        return act(bn(h, p[f"{pre}_g1"], p[f"{pre}_be1"]))

    out_cos = branch("b1", jnp.cos)
    out_rel = branch("b2", lambda v: jnp.maximum(v, 0.0))
    return jnp.concatenate([out_cos, out_rel], axis=1)


# ----------------------------------------------------------------------------
if __name__ == "__main__":
    channel, num_nodes, batch = 4, 16, 8     # input_dim = 64
    hid = 64                                 # DSKN_disc_hid = disc_hid_dim = 64

    key = jax.random.PRNGKey(0)
    kx, kp = jax.random.split(key)
    x = jax.random.normal(kx, (batch, channel, num_nodes), dtype=jnp.float32)

    params = init_params(kp, channel * num_nodes, hid)
    packed = pack_params(params)             # done once, not per forward

    out = jax.jit(advskm_disc_forward)(x, packed)
    jax.block_until_ready(out)
    assert out.shape == (batch, hid)

    # Tight check: same bf16-weight / f32-accumulate math as the kernel
    # (validates the branch packing, block-diag layout, dead-bias removal, BN
    # fold and the cos/ReLU lane split).
    ref_bf16 = advskm_disc_ref(x, params, weight_dtype=jnp.bfloat16)
    assert jnp.allclose(out, ref_bf16, atol=5e-3, rtol=5e-3), \
        float(jnp.max(jnp.abs(out - ref_bf16)))

    # Loose check: full-f32 PyTorch-semantics reference (documents the bf16
    # MXU precision contract).
    ref_f32 = advskm_disc_ref(x, params, weight_dtype=jnp.float32)
    assert jnp.allclose(out, ref_f32, atol=5e-2, rtol=5e-2), \
        float(jnp.max(jnp.abs(out - ref_f32)))

    print("KERNEL_OK")
</pallas_src>

<mosaic_0001>
module attributes {stable_mosaic.version = 11 : i64} {
  func.func @_advskm_kernel(%arg0: memref<8x64xf32, #tpu.memory_space<vmem>>, %arg1: memref<64x128xbf16, #tpu.memory_space<vmem>>, %arg2: memref<128x128xbf16, #tpu.memory_space<vmem>>, %arg3: memref<128x64xbf16, #tpu.memory_space<vmem>>, %arg4: memref<64x64xbf16, #tpu.memory_space<vmem>>, %arg5: memref<3x128xf32, #tpu.memory_space<vmem>>, %arg6: memref<3x64xf32, #tpu.memory_space<vmem>>, %arg7: memref<8x64xf32, #tpu.memory_space<vmem>>) attributes {dimension_semantics = [], scalar_prefetch = 0 : i64, scratch_operands = 0 : i64, tpu.core_type = #tpu.core_type<tc>} {
    %c0 = arith.constant 0 : index
    %c0_0 = arith.constant 0 : index
    %0 = vector.load %arg0[%c0, %c0_0] : memref<8x64xf32, #tpu.memory_space<vmem>>, vector<8x64xf32>
    %c0_1 = arith.constant 0 : index
    %c0_2 = arith.constant 0 : index
    %1 = vector.load %arg5[%c0_1, %c0_2] : memref<3x128xf32, #tpu.memory_space<vmem>>, vector<1x128xf32>
    %c1 = arith.constant 1 : index
    %c0_3 = arith.constant 0 : index
    %2 = vector.load %arg5[%c1, %c0_3] : memref<3x128xf32, #tpu.memory_space<vmem>>, vector<1x128xf32>
    %c2 = arith.constant 2 : index
    %c0_4 = arith.constant 0 : index
    %3 = vector.load %arg5[%c2, %c0_4] : memref<3x128xf32, #tpu.memory_space<vmem>>, vector<1x128xf32>
    %c0_5 = arith.constant 0 : index
    %c0_6 = arith.constant 0 : index
    %4 = vector.load %arg6[%c0_5, %c0_6] : memref<3x64xf32, #tpu.memory_space<vmem>>, vector<1x64xf32>
    %c1_7 = arith.constant 1 : index
    %c0_8 = arith.constant 0 : index
    %5 = vector.load %arg6[%c1_7, %c0_8] : memref<3x64xf32, #tpu.memory_space<vmem>>, vector<1x64xf32>
    %c2_9 = arith.constant 2 : index
    %c0_10 = arith.constant 0 : index
    %6 = vector.load %arg6[%c2_9, %c0_10] : memref<3x64xf32, #tpu.memory_space<vmem>>, vector<1x64xf32>
    %7 = tpu.iota {dimensions = array<i32: 1>} : vector<1x128xi32>
    %c64_i32 = arith.constant 64 : i32
    %8 = vector.broadcast %c64_i32 : i32 to vector<1x128xi32>
    %9 = arith.cmpi slt, %7, %8 : vector<1x128xi32>
    %10 = vector.extract_strided_slice %7 {offsets = [0, 0], sizes = [1, 64], strides = [1, 1]} : vector<1x128xi32> to vector<1x64xi32>
    %c32_i32 = arith.constant 32 : i32
    %11 = vector.broadcast %c32_i32 : i32 to vector<1x64xi32>
    %12 = arith.cmpi slt, %10, %11 : vector<1x64xi32>
    %13 = arith.truncf %0 : vector<8x64xf32> to vector<8x64xbf16>
    %c0_11 = arith.constant 0 : index
    %c0_12 = arith.constant 0 : index
    %14 = vector.load %arg1[%c0_11, %c0_12] : memref<64x128xbf16, #tpu.memory_space<vmem>>, vector<64x128xbf16>
    %cst = arith.constant dense<0.000000e+00> : vector<8x128xf32>
    %15 = tpu.matmul %13, %14, %cst {dimension_numbers = #tpu.dot_dimension_numbers<[1], [0], [0], [1], [0, 0, 1, 1], [], []>} : vector<8x64xbf16>, vector<64x128xbf16>, vector<8x128xf32> -> vector<8x128xf32>
    %16 = vector.broadcast %1 : vector<1x128xf32> to vector<8x128xf32>
    %17 = arith.addf %15, %16 : vector<8x128xf32>
    %18 = arith.truncf %17 : vector<8x128xf32> to vector<8x128xbf16>
    %c0_13 = arith.constant 0 : index
    %c0_14 = arith.constant 0 : index
    %19 = vector.load %arg2[%c0_13, %c0_14] : memref<128x128xbf16, #tpu.memory_space<vmem>>, vector<128x128xbf16>
    %cst_15 = arith.constant dense<0.000000e+00> : vector<8x128xf32>
    %20 = tpu.matmul %18, %19, %cst_15 {dimension_numbers = #tpu.dot_dimension_numbers<[1], [0], [0], [1], [0, 0, 1, 1], [], []>} : vector<8x128xbf16>, vector<128x128xbf16>, vector<8x128xf32> -> vector<8x128xf32>
    %cst_16 = arith.constant dense<0.000000e+00> : vector<128xf32>
    %21 = vector.multi_reduction <add>, %20, %cst_16 [0] : vector<8x128xf32> to vector<128xf32>
    %22 = vector.shape_cast %21 : vector<128xf32> to vector<1x128xf32>
    %cst_17 = arith.constant 8.000000e+00 : f32
    %23 = vector.broadcast %cst_17 : f32 to vector<1x128xf32>
    %24 = arith.divf %22, %23 : vector<1x128xf32>
    %25 = vector.broadcast %24 : vector<1x128xf32> to vector<8x128xf32>
    %26 = arith.subf %20, %25 : vector<8x128xf32>
    %27 = arith.mulf %26, %26 : vector<8x128xf32>
    %cst_18 = arith.constant dense<0.000000e+00> : vector<128xf32>
    %28 = vector.multi_reduction <add>, %27, %cst_18 [0] : vector<8x128xf32> to vector<128xf32>
    %29 = vector.shape_cast %28 : vector<128xf32> to vector<1x128xf32>
    %cst_19 = arith.constant 8.000000e+00 : f32
    %30 = vector.broadcast %cst_19 : f32 to vector<1x128xf32>
    %31 = arith.divf %29, %30 : vector<1x128xf32>
    %cst_20 = arith.constant 9.99999974E-6 : f32
    %32 = vector.broadcast %cst_20 : f32 to vector<1x128xf32>
    %33 = arith.addf %31, %32 : vector<1x128xf32>
    %34 = math.rsqrt %33 : vector<1x128xf32>
    %35 = arith.mulf %2, %34 : vector<1x128xf32>
    %36 = vector.broadcast %35 : vector<1x128xf32> to vector<8x128xf32>
    %37 = arith.mulf %26, %36 : vector<8x128xf32>
    %38 = vector.broadcast %3 : vector<1x128xf32> to vector<8x128xf32>
    %39 = arith.addf %37, %38 : vector<8x128xf32>
    %40 = math.cos %39 : vector<8x128xf32>
    %cst_21 = arith.constant 0.000000e+00 : f32
    %41 = vector.broadcast %cst_21 : f32 to vector<8x128xf32>
    %42 = arith.maximumf %39, %41 : vector<8x128xf32>
    %43 = vector.shape_cast %9 : vector<1x128xi1> to vector<1x128xi1>
    %44 = vector.broadcast %43 : vector<1x128xi1> to vector<8x128xi1>
    %45 = arith.select %44, %40, %42 : vector<8x128xi1>, vector<8x128xf32>
    %46 = arith.truncf %45 : vector<8x128xf32> to vector<8x128xbf16>
    %c0_22 = arith.constant 0 : index
    %c0_23 = arith.constant 0 : index
    %47 = vector.load %arg3[%c0_22, %c0_23] : memref<128x64xbf16, #tpu.memory_space<vmem>>, vector<128x64xbf16>
    %cst_24 = arith.constant dense<0.000000e+00> : vector<8x64xf32>
    %48 = tpu.matmul %46, %47, %cst_24 {dimension_numbers = #tpu.dot_dimension_numbers<[1], [0], [0], [1], [0, 0, 1, 1], [], []>} : vector<8x128xbf16>, vector<128x64xbf16>, vector<8x64xf32> -> vector<8x64xf32>
    %49 = vector.broadcast %4 : vector<1x64xf32> to vector<8x64xf32>
    %50 = arith.addf %48, %49 : vector<8x64xf32>
    %51 = arith.truncf %50 : vector<8x64xf32> to vector<8x64xbf16>
    %c0_25 = arith.constant 0 : index
    %c0_26 = arith.constant 0 : index
    %52 = vector.load %arg4[%c0_25, %c0_26] : memref<64x64xbf16, #tpu.memory_space<vmem>>, vector<64x64xbf16>
    %cst_27 = arith.constant dense<0.000000e+00> : vector<8x64xf32>
    %53 = tpu.matmul %51, %52, %cst_27 {dimension_numbers = #tpu.dot_dimension_numbers<[1], [0], [0], [1], [0, 0, 1, 1], [], []>} : vector<8x64xbf16>, vector<64x64xbf16>, vector<8x64xf32> -> vector<8x64xf32>
    %cst_28 = arith.constant dense<0.000000e+00> : vector<64xf32>
    %54 = vector.multi_reduction <add>, %53, %cst_28 [0] : vector<8x64xf32> to vector<64xf32>
    %55 = vector.shape_cast %54 : vector<64xf32> to vector<1x64xf32>
    %cst_29 = arith.constant 8.000000e+00 : f32
    %56 = vector.broadcast %cst_29 : f32 to vector<1x64xf32>
    %57 = arith.divf %55, %56 : vector<1x64xf32>
    %58 = vector.broadcast %57 : vector<1x64xf32> to vector<8x64xf32>
    %59 = arith.subf %53, %58 : vector<8x64xf32>
    %60 = arith.mulf %59, %59 : vector<8x64xf32>
    %cst_30 = arith.constant dense<0.000000e+00> : vector<64xf32>
    %61 = vector.multi_reduction <add>, %60, %cst_30 [0] : vector<8x64xf32> to vector<64xf32>
    %62 = vector.shape_cast %61 : vector<64xf32> to vector<1x64xf32>
    %cst_31 = arith.constant 8.000000e+00 : f32
    %63 = vector.broadcast %cst_31 : f32 to vector<1x64xf32>
    %64 = arith.divf %62, %63 : vector<1x64xf32>
    %cst_32 = arith.constant 9.99999974E-6 : f32
    %65 = vector.broadcast %cst_32 : f32 to vector<1x64xf32>
    %66 = arith.addf %64, %65 : vector<1x64xf32>
    %67 = math.rsqrt %66 : vector<1x64xf32>
    %68 = arith.mulf %5, %67 : vector<1x64xf32>
    %69 = vector.broadcast %68 : vector<1x64xf32> to vector<8x64xf32>
    %70 = arith.mulf %59, %69 : vector<8x64xf32>
    %71 = vector.broadcast %6 : vector<1x64xf32> to vector<8x64xf32>
    %72 = arith.addf %70, %71 : vector<8x64xf32>
    %73 = math.cos %72 : vector<8x64xf32>
    %cst_33 = arith.constant 0.000000e+00 : f32
    %74 = vector.broadcast %cst_33 : f32 to vector<8x64xf32>
    %75 = arith.maximumf %72, %74 : vector<8x64xf32>
    %76 = vector.shape_cast %12 : vector<1x64xi1> to vector<1x64xi1>
    %77 = vector.broadcast %76 : vector<1x64xi1> to vector<8x64xi1>
    %78 = arith.select %77, %73, %75 : vector<8x64xi1>, vector<8x64xf32>
    %c0_34 = arith.constant 0 : index
    %c0_35 = arith.constant 0 : index
    %79 = vector.load %arg7[%c0_34, %c0_35] : memref<8x64xf32, #tpu.memory_space<vmem>>, vector<8x64xf32>
    tpu.vector_store %arg7[%c0_34, %c0_35], %78 {strides = array<i32>} : memref<8x64xf32, #tpu.memory_space<vmem>>, vector<8x64xf32>,
    return
  }
}

</mosaic_0001>

<bundles_post_ra>
// kernel: advskm_disc_forward.1
= control target key start
LH: loop header
LB: loop body
LE: loop exit
PB: predicated region body
PF: predicated region fallthrough
CT: control target
= control target key end

     0   :  { %12 = vsyncpa [#allocation3], 0  ;;  %s1222_s0 = inlined_call_operand.vmem [shape: f32[8,64], index: 0, kind: input, shape index: {}]   ;;  %s1223_s1 = inlined_call_operand.vmem [shape: bf16[64,128], index: 1, kind: input, shape index: {}]   ;;  %s1224_s2 = inlined_call_operand.vmem [shape: bf16[128,128], index: 2, kind: input, shape index: {}]   ;;  %s1225_s3 = inlined_call_operand.vmem [shape: bf16[128,64], index: 3, kind: input, shape index: {}]   ;;  %s1226_s4 = inlined_call_operand.hbm [shape: bf16[64,64], index: 4, kind: input, shape index: {}]   ;;  %s1227_s5 = inlined_call_operand.vmem [shape: f32[3,128], index: 5, kind: input, shape index: {}]   ;;  %s1228_s6 = inlined_call_operand.vmem [shape: f32[3,64], index: 6, kind: input, shape index: {}]   ;;  %s1229_s7 = inlined_call_operand.hbm [shape: f32[8,64], index: 7, kind: output, shape index: {}]  }
   0x1   :  { %13 = vsyncpa [#allocation4], 0  ;;  %s949_s24 = smov [#allocation2]   ;;  %s901_s28 = scalar_lea.hbm %s1226_s4, 512 }
   0x2   :  { %s27_s25 = sshll.u32 %s949_s24, 4  ;;  %p902_p0 = scmp.ne.s32.totalorder %s1226_s4, %s901_s28  ;;  %s28_s25 = int_to_ptr.vmem [resolvable:$true] %s27_s25 }
   0x3   :  { %p905_p1 = scmp.lt.u32.totalorder %s901_s28, %s1226_s4 }
   0x5   :  { %p907_p2 = pnand %p905_p1, %p902_p0 }
   0x7   :  { %910 = shalt.err (!%p907_p2)
}
   0x8   :  { %s911_s10 = scalar_lea.vmem %s28_s25, 512  ;;  %p916_p4 = scmp.lt.s32.totalorder %s28_s25, %s28_s25 }
   0x9   :  { %p912_p3 = scmp.ne.s32.totalorder %s28_s25, %s911_s10  ;;  %p917_p5 = scmp.lt.s32.totalorder %s911_s10, %s911_s10 }
   0xb   :  { %p918_p6 = por %p917_p5, %p916_p4 }
   0xd   :  { %p919_p7 = pnand %p918_p6, %p912_p3 }
   0xf   :  { %922 = shalt.err (!%p919_p7)
}
  0x10   :  { %s950_s11 = smov 64   ;;  %s951_s12 = smov 4  }
  0x11   :  { %33 = dma.hbm_to_vmem [thread:$0]  %s1226_s4, 512, %s28_s25, [#allocation3], %s950_s11, %s950_s11, %s951_s12  }
  0x12   :  { %945 = dma.done.wait [#allocation3], 512  }
  0x13   :  { %946 = vsyncadd [#allocation3], 4294966784  ;;  %v952_v0 = vmov 0.0   ;;  %vm953_vm0 = vmmov 0   ;;  %v865_v1 = vld [vmem:[%s1223_s1] sm:$0xff]   ;;  %v866_v2 = vld [vmem:[%s1223_s1 + $0x8] sm:$0xff]   ;;  %v49_v54 = vlaneseq }
  0x14   :  { %781 = vmatprep.subr.bf16.mxu0 %v952_v0  ;;  %789 = vmatprep.mubr.msk.bf16.mxu0 %vm953_vm0, %v952_v0  ;;  %v869_v3 = vld [vmem:[%s1224_s2] sm:$0xff]   ;;  %v867_v4 = vld [vmem:[%s1223_s1 + $0x10] sm:$0xff]   ;;  %v870_v5 = vld [vmem:[%s1224_s2 + $0x8] sm:$0xff]   ;;  %vm90_vm1 = vcmask 523264  }
  0x15   :  { %793 = vmatprep.subr.bf16.mxu1 %v952_v0  ;;  %809 = vmatprep.mubr.msk.bf16.mxu1 %vm953_vm0, %v952_v0  ;;  %v868_v6 = vld [vmem:[%s1223_s1 + $0x18] sm:$0xff]   ;;  %v42_v7 = vld [vmem:[%s1222_s0] sm:$0xff]  ;;  %v871_v8 = vld [vmem:[%s1224_s2 + $0x10] sm:$0xff]   ;;  %v1113_v55 = vshrl.u32 %v49_v54, 7 }
  0x16   :  { %782 = vmatpush3.bf16.msra.mxu0 %v865_v1  ;;  %794 = vmatpush3.bf16.msra.mxu1 %v869_v3  ;;  %v53_v9 = vpack.c.bf16 %v42_v7, %v42_v7  ;;  %v872_v10 = vld [vmem:[%s1224_s2 + $0x18] sm:$0xff]   ;;  %v873_v11 = vld [vmem:[%s1224_s2 + $0x20] sm:$0xff]   ;;  %v874_v12 = vld [vmem:[%s1224_s2 + $0x28] sm:$0xff]  }
  0x17   :  { %783 = vmatprep.subr.bf16.mxu0 %v952_v0  ;;  %795 = vmatprep.subr.bf16.mxu1 %v952_v0  ;;  %v875_v13 = vld [vmem:[%s1224_s2 + $0x30] sm:$0xff]   ;;  %v876_v14 = vld [vmem:[%s1224_s2 + $0x38] sm:$0xff]   ;;  %v715_v15 = vld [vmem:[%s1227_s5] ss:$0 sm:$0xff]  ;;  %v261_v57 = vsub.s32 0, %v1113_v55 }
  0x18   :  { %v877_v22 = vld [vmem:[%s1225_s3] sm:$0xff]   ;;  %v878_v23 = vld [vmem:[%s1225_s3 + $0x8] sm:$0xff]   ;;  %v879_v24 = vld [vmem:[%s1225_s3 + $0x10] sm:$0xff]  }
  0x19   :  { %v880_v25 = vld [vmem:[%s1225_s3 + $0x18] sm:$0xff]   ;;  %v881_v26 = vld [vmem:[%s1225_s3 + $0x20] sm:$0xff]   ;;  %v882_v27 = vld [vmem:[%s1225_s3 + $0x28] sm:$0xff]  }
  0x1a   :  { %784 = vmatpush3.bf16.msra.mxu0 %v866_v2  ;;  %796 = vmatpush3.bf16.msra.mxu1 %v870_v5  ;;  %v883_v28 = vld [vmem:[%s1225_s3 + $0x30] sm:$0xff]   ;;  %v884_v29 = vld [vmem:[%s1225_s3 + $0x38] sm:$0xff]   ;;  %v885_v40 = vld [vmem:[#allocation2] sm:$0xff]  }
  0x1b   :  { %785 = vmatprep.subr.bf16.mxu0 %v952_v0  ;;  %797 = vmatprep.subr.bf16.mxu1 %v952_v0  ;;  %v886_v42 = vld [vmem:[#allocation2 + $0x8] sm:$0xff]   ;;  %v887_v45 = vld [vmem:[#allocation2 + $0x10] sm:$0xff]   ;;  %v44_v56 = vld [vmem:[%s1227_s5 + $0x1] sm:$0x1] }
  0x1c   :  { %v729_v61 = vld [vmem:[%s1227_s5 + $0x2] ss:$0 sm:$0xff] }
  0x1e   :  { %786 = vmatpush3.bf16.msra.mxu0 %v867_v4  ;;  %798 = vmatpush3.bf16.msra.mxu1 %v871_v8 }
  0x1f   :  { %787 = vmatprep.subr.bf16.mxu0 %v952_v0  ;;  %799 = vmatprep.subr.bf16.mxu1 %v952_v0 }
  0x22   :  { %788 = vmatpush3.bf16.msra.mxu0 %v868_v6  ;;  %800 = vmatpush3.bf16.msra.mxu1 %v872_v10  ;;  %v954_v10 = vmov 683565275  }
  0x23   :  { %813 = vmatprep.subr.bf16.mxu0 %v952_v0  ;;  %801 = vmatprep.subr.bf16.mxu1 %v952_v0 }
  0x25   :  { %790 = vmatmul.mubr.msk.bf16.vlgmr.msra.gmra.mrb[0].mxu0 %vm90_vm1, %v53_v9 }
  0x26   :  { %829 = vmatprep.mubr.msk.bf16.mxu0 %vm953_vm0, %v952_v0  ;;  %802 = vmatpush3.bf16.msra.mxu1 %v873_v11 }
  0x27   :  { %803 = vmatprep.subr.bf16.mxu1 %v952_v0  ;;  %814 = vmatpush3.bf16.msra.mxu0 %v877_v22 }
  0x28   :  { %815 = vmatprep.subr.bf16.mxu0 %v952_v0 }
  0x2a   :  { %804 = vmatpush3.bf16.msra.mxu1 %v874_v12  ;;  %v955_v12 = vmov 2475754826  }
  0x2b   :  { %805 = vmatprep.subr.bf16.mxu1 %v952_v0  ;;  %816 = vmatpush3.bf16.msra.mxu0 %v878_v23 }
  0x2c   :  { %817 = vmatprep.subr.bf16.mxu0 %v952_v0 }
  0x2e   :  { %806 = vmatpush3.bf16.msra.mxu1 %v875_v13 }
  0x2f   :  { %807 = vmatprep.subr.bf16.mxu1 %v952_v0  ;;  %818 = vmatpush3.bf16.msra.mxu0 %v879_v24  ;;  %v959_v24 = vmov 1326507024  }
  0x30   :  { %819 = vmatprep.subr.bf16.mxu0 %v952_v0 }
  0x32   :  { %808 = vmatpush3.bf16.msra.mxu1 %v876_v14 }
  0x33   :  { %833 = vmatprep.subr.bf16.mxu1 %v952_v0  ;;  %820 = vmatpush3.bf16.msra.mxu0 %v880_v25 }
  0x34   :  { %821 = vmatprep.subr.bf16.mxu0 %v952_v0 }
  0x37   :  { %822 = vmatpush3.bf16.msra.mxu0 %v881_v26 }
  0x38   :  { %823 = vmatprep.subr.bf16.mxu0 %v952_v0 }
  0x3b   :  { %824 = vmatpush3.bf16.msra.mxu0 %v882_v27 }
  0x3c   :  { %825 = vmatprep.subr.bf16.mxu0 %v952_v0 }
  0x3f   :  { %826 = vmatpush3.bf16.msra.mxu0 %v883_v28 }
  0x40   :  { %827 = vmatprep.subr.bf16.mxu0 %v952_v0 }
  0x43   :  { %828 = vmatpush3.bf16.msra.mxu0 %v884_v29 }
  0xf8   :  { %v128_v16 = vpop.f32.mrb[0].mxu0 }
  0xf9   :  { %v129_v17 = vadd.f32 %v715_v15, %v128_v16  ;;  %v791_v18 = vpop.f32.mrb[1].mxu0  ;;  %v956_v15 = vmov 2131351028  }
  0xfa   :  { %v131_v19 = vpop.f32.mrb[2].mxu0  ;;  %v957_v18 = vmov 2102212464  }
  0xfb   :  { %v134_v20 = vpack.c.bf16 %v129_v17, %v129_v17  ;;  %v792_v21 = vpop.f32.mrb[3].mxu0 }
  0xfc   :  { %v958_v21 = vmov 920167782  }
  0xfd   :  { %810 = vmatmul.mubr.bf16.vlgmr.msra.gmra.mrb[0].mxu1 %v134_v20 }
  0xfe   :  { %841 = vmatprep.mubr.msk.bf16.mxu1 %vm953_vm0, %v952_v0  ;;  %834 = vmatpush3.bf16.msra.mxu1 %v885_v40 }
  0xff   :  { %835 = vmatprep.subr.bf16.mxu1 %v952_v0 }
 0x102   :  { %836 = vmatpush3.bf16.msra.mxu1 %v886_v42 }
 0x103   :  { %837 = vmatprep.subr.bf16.mxu1 %v952_v0 }
 0x106   :  { %838 = vmatpush3.bf16.msra.mxu1 %v887_v45 }
 0x107   :  { %839 = vmatprep.subr.bf16.mxu1 %v952_v0 }
 0x1d0   :  { %v233_v30 = vpop.f32.mrb[0].mxu1 }
 0x1d1   :  { %v239_v31 = vrot.slane %v233_v30, 4  ;;  %v811_v32 = vpop.f32.mrb[1].mxu1 }
 0x1d2   :  { %v236_v33 = vpop.f32.mrb[2].mxu1 }
 0x1d3   :  { %v240_v34 = vadd.f32 %v239_v31, %v233_v30  ;;  %v812_v35 = vpop.f32.mrb[3].mxu1 }
 0x1d5   :  { %v241_v36 = vrot.slane %v240_v34, 2 }
 0x1d7   :  { %v242_v37 = vadd.f32 %v241_v36, %v240_v34 }
 0x1d9   :  { %v243_v38 = vrot.slane %v242_v37, 1 }
 0x1db   :  { %v244_v39 = vadd.f32 %v243_v38, %v242_v37 }
 0x1dd   :  { %v246_v41 = vmul.f32 0.125, %v244_v39 }
 0x1df   :  { %v247_v43 = vsub.f32 %v233_v30, %v246_v41 }
 0x1e1   :  { %v248_v44 = vmul.f32 %v247_v43, %v247_v43 }
 0x1e3   :  { %v249_v46 = vrot.slane %v248_v44, 4 }
 0x1e5   :  { %v250_v47 = vadd.f32 %v249_v46, %v248_v44 }
 0x1e7   :  { %v251_v48 = vrot.slane %v250_v47, 2 }
 0x1e9   :  { %v252_v49 = vadd.f32 %v251_v48, %v250_v47 }
 0x1eb   :  { %v253_v50 = vrot.slane %v252_v49, 1 }
 0x1ed   :  { %v254_v51 = vadd.f32 %v253_v50, %v252_v49 }
 0x1ef   :  { %v255_v52 = vmul.f32 0.125, %v254_v51 }
 0x1f1   :  { %v256_v53 = vadd.f32 1e-05, %v255_v52 }
 0x1f3   :  { %889 = vrsqrt.f32 %v256_v53 }
 0x1fd   :  { %v890_v58 = vpop.eup %889 }
 0x1fe   :  { %v258_v59 = vmul.f32 %v890_v58, %v44_v56 }
 0x200   :  { %v262_v60 = vrot.slane %v258_v59, %v261_v57 }
 0x202   :  { %v263_v62 = vmul.f32 %v262_v60, %v247_v43 }
 0x204   :  { %v1124_v63 = vadd.f32 %v729_v61, %v263_v62 }
 0x206   :  { %v272_v0 = vand.u32 2139095040, %v1124_v63  ;;  %v269_v4 = vand.u32 2147483647, %v1124_v63  ;;  %vm271_vm9 = vcmp.lt.s32.totalorder %v1124_v63, 0  ;;  %vm361_vm15 = vweird.f32 %v1124_v63 }
 0x208   :  { %v273_v1 = vshrl.u32 %v272_v0, 23  ;;  %v276_v8 = vand.u32 8388607, %v269_v4  ;;  %vm270_vm10 = vcmp.le.f32.partialorder %v269_v4, 0.7853982 }
 0x20a   :  { %v730_v2 = vadd.s32 4294967169, %v273_v1  ;;  %v277_v26 = vor.u32 8388608, %v276_v8 }
 0x20c   :  { %v279_v3 = vadd.s32 1, %v730_v2  ;;  %v317_v40 = vshll.u32 %v277_v26, 8 }
 0x20e   :  { %vm280_vm2 = vcmp.gt.s32.totalorder %v279_v3, 0 }
 0x20f   :  { %v281_v5 = vsel %vm280_vm2, %v279_v3, 0 }
 0x210   :  { %v283_v6 = vand.u32 31, %v281_v5  ;;  %v282_v9 = vshrl.u32 %v281_v5, 5 }
 0x212   :  { %v284_v7 = vsub.s32 32, %v283_v6  ;;  %v286_v11 = vshll.u32 %v954_v10, %v283_v6  ;;  %v289_v13 = vshll.u32 %v955_v12, %v283_v6  ;;  %v292_v17 = vshll.u32 %v956_v15, %v283_v6 }
 0x213   :  { %v295_v20 = vshll.u32 %v957_v18, %v283_v6  ;;  %v298_v23 = vshll.u32 %v958_v21, %v283_v6  ;;  %vm301_vm3 = vcmp.lt.s32.totalorder %v282_v9, 1  ;;  %vm304_vm4 = vcmp.lt.s32.totalorder %v282_v9, 4 }
 0x214   :  { %v287_v14 = vshrl.u32 %v955_v12, %v284_v7  ;;  %v290_v16 = vshrl.u32 %v956_v15, %v284_v7  ;;  %v293_v19 = vshrl.u32 %v957_v18, %v284_v7  ;;  %v296_v22 = vshrl.u32 %v958_v21, %v284_v7 }
 0x215   :  { %v299_v25 = vshrl.u32 %v959_v24, %v284_v7  ;;  %v285_v35 = vshrl.u32 %v954_v10, %v284_v7  ;;  %vm303_vm5 = vcmp.lt.s32.totalorder %v282_v9, 3  ;;  %vm302_vm6 = vcmp.lt.s32.totalorder %v282_v9, 2 }
 0x216   :  { %v288_v27 = vor.u32 %v287_v14, %v286_v11  ;;  %v291_v28 = vor.u32 %v290_v16, %v289_v13  ;;  %v294_v29 = vor.u32 %v293_v19, %v292_v17  ;;  %v297_v30 = vor.u32 %v296_v22, %v295_v20 }
 0x217   :  { %v300_v31 = vor.u32 %v299_v25, %v298_v23 }
 0x218   :  { %v306_v32 = vsel %vm304_vm4, %v294_v29, 2102212464  ;;  %v309_v33 = vsel %vm301_vm3, %v288_v27, %v291_v28  ;;  %v313_v34 = vsel %vm301_vm3, %v291_v28, %v294_v29  ;;  %v310_v36 = vsel %vm304_vm4, %v297_v30, 920167782 }
 0x219   :  { %v314_v37 = vsel %vm304_vm4, %v300_v31, 1326507024  ;;  %v311_v38 = vsel %vm303_vm5, %v294_v29, %v310_v36  ;;  %v305_v41 = vsel %vm301_vm3, %v285_v35, %v288_v27  ;;  %v307_v42 = vsel %vm303_vm5, %v291_v28, %v306_v32 }
 0x21a   :  { %v315_v39 = vsel %vm303_vm5, %v297_v30, %v314_v37  ;;  %v312_v43 = vsel %vm302_vm6, %v309_v33, %v311_v38  ;;  %v308_v49 = vsel %vm302_vm6, %v305_v41, %v307_v42  ;;  %v1156_v30 = vand.u32 127, %v49_v54  ;;  %v888_v54 = vld [vmem:[#allocation2 + $0x18] sm:$0xff]  }
 0x21b   :  { %v316_v44 = vsel %vm302_vm6, %v313_v34, %v315_v39  ;;  %v1144_v47 = vmul.u32.u64.low %v317_v40, %v312_v43  ;;  %v1145_v48 = vmul.u32.u64.high %v317_v40, %v312_v43, %v1144_v47  ;;  %v324_v51 = vmul.u32 %v317_v40, %v308_v49  ;;  %840 = vmatpush3.bf16.msra.mxu1 %v888_v54 }
 0x21c   :  { %v1141_v45 = vmul.u32.u64.low %v317_v40, %v316_v44  ;;  %v1142_v46 = vmul.u32.u64.high %v317_v40, %v316_v44, %v1141_v45  ;;  %vm51_vm13 = vcmp.lt.s32.totalorder %v1156_v30, 64  ;;  %v372_v36 = vmax.f32 %v1124_v63, 0.0  ;;  %v734_v40 = vld [vmem:[%s1228_s6] ss:$0 sm:$0xff] }
 0x21d   :  { %v327_v50 = vadd.s32 1, %v1145_v48 }
 0x21e   :  { %vm326_vm7 = vc.u32 %v1142_v46, %v1144_v47  ;;  %v325_v3 = vadd.s32 %v1144_v47, %v1142_v46 }
 0x21f   :  { %v328_v52 = vsel %vm326_vm7, %v327_v50, %v1145_v48 }
 0x220   :  { %v329_v53 = vadd.s32 %v328_v52, %v324_v51 }
 0x222   :  { %v330_v56 = vadd.s32 536870912, %v329_v53 }
 0x224   :  { %v331_v58 = vshrl.u32 %v330_v56, 30 }
 0x226   :  { %v332_v59 = vshll.u32 %v331_v58, 30  ;;  %v355_v23 = vsub.s32 4, %v331_v58 }
 0x228   :  { %v333_v60 = vsub.s32 %v329_v53, %v332_v59  ;;  %v356_v26 = vsel %vm271_vm9, %v355_v23, %v331_v58 }
 0x229   :  { %v358_v27 = vsel %vm270_vm10, 0, %v356_v26 }
 0x22a   :  { %v335_v61 = vsub.s32 0, %v333_v60  ;;  %v362_v28 = vand.u32 3, %v358_v27 }
 0x22c   :  { %v731_v62 = vmin.u32 %v335_v61, %v333_v60  ;;  %vm367_vm11 = vcmp.eq.s32.totalorder %v362_v28, 2  ;;  %vm364_vm12 = vcmp.eq.s32.totalorder %v362_v28, 0  ;;  %vm363_vm14 = vcmp.lt.s32.totalorder %v362_v28, 2 }
 0x22e   :  { %v337_v0 = vclz %v731_v62 }
 0x230   :  { %v732_v1 = vadd.s32 4294967294, %v337_v0 }
 0x232   :  { %vm733_vm8 = vcmp.lt.s32.totalorder %v732_v1, 0 }
 0x233   :  { %v340_v2 = vsel %vm733_vm8, 0, %v732_v1 }
 0x234   :  { %v341_v5 = vsub.s32 32, %v340_v2  ;;  %v345_v6 = vsub.s32 4294967266, %v340_v2  ;;  %v342_v7 = vshll.u32 %v333_v60, %v340_v2 }
 0x236   :  { %v343_v8 = vshrl.u32 %v325_v3, %v341_v5  ;;  %v346_v9 = vadd.s32 127, %v345_v6 }
 0x238   :  { %v344_v11 = vor.u32 %v343_v8, %v342_v7  ;;  %v347_v13 = vshll.u32 %v346_v9, 23 }
 0x23a   :  { %v348_v14 = vor.u32 4788187, %v347_v13  ;;  %v351_v17 = vcvt.s32.f32 %v344_v11  ;;  %v47_v11 = vld [vmem:[%s1228_s6 + $0x1] sm:$0x1] }
 0x23c   :  { %v349_v16 = vand.u32 2147483647, %v348_v14 }
 0x23e   :  { %v352_v19 = vmul.f32 %v351_v17, %v349_v16  ;;  %v748_v17 = vld [vmem:[%s1228_s6 + $0x2] ss:$0 sm:$0xff]  ;;  %s960_s6 = smov [#allocation5]  }
 0x23f   :  { %s706_s14 = sshll.u32 %s960_s6, 4  ;;  %s707_s14 = int_to_ptr.vmem [resolvable:$true] %s706_s14 }
 0x240   :  { %v353_v20 = vxor.u32 2147483648, %v352_v19  ;;  %s923_s15 = scalar_lea.vmem %s707_s14, 128  ;;  %p928_p9 = scmp.lt.s32.totalorder %s707_s14, %s707_s14 }
 0x241   :  { %p924_p8 = scmp.ne.s32.totalorder %s707_s14, %s923_s15  ;;  %p929_p10 = scmp.lt.s32.totalorder %s923_s15, %s923_s15 }
 0x242   :  { %v354_v22 = vsel %vm271_vm9, %v353_v20, %v352_v19 }
 0x243   :  { %v357_v25 = vsel %vm270_vm10, %v1124_v63, %v354_v22  ;;  %p930_p11 = por %p929_p10, %p928_p9 }
 0x244   :  { %891 = vcosq.f32 %v357_v25 }
 0x245   :  { %893 = vsinq.f32 %v357_v25  ;;  %p931_p12 = pnand %p930_p11, %p924_p8 }
 0x24e   :  { %v892_v29 = vpop.eup %891 }
 0x24f   :  { %v894_v31 = vpop.eup %893  ;;  %v368_v32 = vxor.u32 2147483648, %v892_v29 }
 0x250   :  { %v365_v33 = vxor.u32 2147483648, %v894_v31 }
 0x251   :  { %v369_v34 = vsel %vm367_vm11, %v368_v32, %v894_v31 }
 0x252   :  { %v366_v4 = vsel %vm364_vm12, %v892_v29, %v365_v33  ;;  %vm52_vm12 = vcmp.lt.s32.totalorder %v1156_v30, 32 }
 0x253   :  { %v370_v35 = vsel %vm363_vm14, %v366_v4, %v369_v34 }
 0x254   :  { %v371_v37 = vsel %vm361_vm15, nan, %v370_v35 }
 0x255   :  { %v375_v38 = vsel %vm51_vm13, %v371_v37, %v372_v36 }
 0x256   :  { %v376_v39 = vpack.c.bf16 %v375_v38, %v375_v38 }
 0x258   :  { %830 = vmatmul.mubr.bf16.vlgmr.msra.gmra.mrb[4].mxu0 %v376_v39 }
 0x32b   :  { %v479_v41 = vpop.f32.mrb[4].mxu0 }
 0x32c   :  { %v480_v42 = vadd.f32 %v734_v40, %v479_v41  ;;  %v831_v43 = vpop.f32.mrb[5].mxu0 }
 0x32d   :  { %v482_v44 = vpop.f32.mrb[6].mxu0 }
 0x32e   :  { %v485_v45 = vpack.c.bf16 %v480_v42, %v480_v42  ;;  %v832_v46 = vpop.f32.mrb[7].mxu0 }
 0x330   :  { %842 = vmatmul.mubr.msk.bf16.vlgmr.msra.gmra.mrb[4].mxu1 %vm90_vm1, %v485_v45 }
 0x403   :  { %v555_v47 = vpop.f32.mrb[4].mxu1 }
 0x404   :  { %v561_v63 = vsel %vm90_vm1, %v555_v47, 0.0  ;;  %v843_v48 = vpop.f32.mrb[5].mxu1 }
 0x405   :  { %v562_v49 = vrot.slane %v561_v63, 4  ;;  %v558_v50 = vpop.f32.mrb[6].mxu1 }
 0x406   :  { %v844_v51 = vpop.f32.mrb[7].mxu1 }
 0x407   :  { %v563_v52 = vadd.f32 %v562_v49, %v561_v63 }
 0x409   :  { %v564_v53 = vrot.slane %v563_v52, 2 }
 0x40b   :  { %v565_v56 = vadd.f32 %v564_v53, %v563_v52 }
 0x40d   :  { %v566_v58 = vrot.slane %v565_v56, 1 }
 0x40f   :  { %v567_v59 = vadd.f32 %v566_v58, %v565_v56 }
 0x411   :  { %v568_v60 = vmul.f32 0.125, %v567_v59 }
 0x413   :  { %v569_v61 = vsub.f32 %v555_v47, %v568_v60 }
 0x415   :  { %v570_v62 = vmul.f32 %v569_v61, %v569_v61 }
 0x417   :  { %v571_v0 = vsel %vm90_vm1, %v570_v62, 0.0 }
 0x418   :  { %v572_v1 = vrot.slane %v571_v0, 4 }
 0x41a   :  { %v573_v2 = vadd.f32 %v572_v1, %v571_v0 }
 0x41c   :  { %v574_v3 = vrot.slane %v573_v2, 2 }
 0x41e   :  { %v575_v5 = vadd.f32 %v574_v3, %v573_v2 }
 0x420   :  { %v576_v6 = vrot.slane %v575_v5, 1 }
 0x422   :  { %v577_v7 = vadd.f32 %v576_v6, %v575_v5 }
 0x424   :  { %v578_v8 = vmul.f32 0.125, %v577_v7 }
 0x426   :  { %v579_v9 = vadd.f32 1e-05, %v578_v8 }
 0x428   :  { %895 = vrsqrt.f32 %v579_v9 }
 0x432   :  { %v896_v13 = vpop.eup %895 }
 0x433   :  { %v581_v14 = vmul.f32 %v896_v13, %v47_v11 }
 0x435   :  { %v585_v16 = vrot.slane %v581_v14, %v261_v57 }
 0x437   :  { %v586_v19 = vmul.f32 %v585_v16, %v569_v61 }
 0x439   :  { %v1175_v20 = vadd.f32 %v748_v17, %v586_v19 }
 0x43b   :  { %v595_v22 = vand.u32 2139095040, %v1175_v20  ;;  %v592_v27 = vand.u32 2147483647, %v1175_v20  ;;  %vm594_vm8 = vcmp.lt.s32.totalorder %v1175_v20, 0  ;;  %vm684_vm14 = vweird.f32 %v1175_v20 }
 0x43d   :  { %v596_v23 = vshrl.u32 %v595_v22, 23  ;;  %v599_v55 = vand.u32 8388607, %v592_v27  ;;  %vm593_vm9 = vcmp.le.f32.partialorder %v592_v27, 0.7853982 }
 0x43f   :  { %v749_v25 = vadd.s32 4294967169, %v596_v23  ;;  %v600_v40 = vor.u32 8388608, %v599_v55 }
 0x441   :  { %v602_v26 = vadd.s32 1, %v749_v25 }
 0x443   :  { %vm603_vm0 = vcmp.gt.s32.totalorder %v602_v26, 0 }
 0x444   :  { %v604_v28 = vsel %vm603_vm0, %v602_v26, 0 }
 0x445   :  { %v606_v29 = vand.u32 31, %v604_v28  ;;  %v605_v57 = vshrl.u32 %v604_v28, 5 }
 0x447   :  { %v607_v31 = vsub.s32 32, %v606_v29  ;;  %v609_v32 = vshll.u32 %v954_v10, %v606_v29  ;;  %v612_v33 = vshll.u32 %v955_v12, %v606_v29  ;;  %v615_v35 = vshll.u32 %v956_v15, %v606_v29 }
 0x448   :  { %v618_v37 = vshll.u32 %v957_v18, %v606_v29  ;;  %v621_v39 = vshll.u32 %v958_v21, %v606_v29  ;;  %vm624_vm2 = vcmp.lt.s32.totalorder %v605_v57, 1  ;;  %vm627_vm3 = vcmp.lt.s32.totalorder %v605_v57, 4 }
 0x449   :  { %v610_v34 = vshrl.u32 %v955_v12, %v607_v31  ;;  %v613_v4 = vshrl.u32 %v956_v15, %v607_v31  ;;  %v616_v36 = vshrl.u32 %v957_v18, %v607_v31  ;;  %v619_v38 = vshrl.u32 %v958_v21, %v607_v31 }
 0x44a   :  { %v622_v54 = vshrl.u32 %v959_v24, %v607_v31  ;;  %v608_v47 = vshrl.u32 %v954_v10, %v607_v31  ;;  %vm626_vm4 = vcmp.lt.s32.totalorder %v605_v57, 3  ;;  %vm625_vm5 = vcmp.lt.s32.totalorder %v605_v57, 2 }
 0x44b   :  { %v611_v41 = vor.u32 %v610_v34, %v609_v32  ;;  %v614_v42 = vor.u32 %v613_v4, %v612_v33  ;;  %v617_v43 = vor.u32 %v616_v36, %v615_v35  ;;  %v620_v44 = vor.u32 %v619_v38, %v618_v37 }
 0x44c   :  { %v623_v12 = vor.u32 %v622_v54, %v621_v39  ;;  %v640_v24 = vshll.u32 %v600_v40, 8 }
 0x44d   :  { %v629_v45 = vsel %vm627_vm3, %v617_v43, 2102212464  ;;  %v632_v15 = vsel %vm624_vm2, %v611_v41, %v614_v42  ;;  %v636_v46 = vsel %vm624_vm2, %v614_v42, %v617_v43  ;;  %v633_v18 = vsel %vm627_vm3, %v620_v44, 920167782 }
 0x44e   :  { %v637_v63 = vsel %vm627_vm3, %v623_v12, 1326507024  ;;  %v634_v21 = vsel %vm626_vm4, %v617_v43, %v633_v18  ;;  %v628_v49 = vsel %vm624_vm2, %v608_v47, %v611_v41  ;;  %v630_v50 = vsel %vm626_vm4, %v614_v42, %v629_v45 }
 0x44f   :  { %v638_v48 = vsel %vm626_vm4, %v620_v44, %v637_v63  ;;  %v635_v51 = vsel %vm625_vm5, %v632_v15, %v634_v21  ;;  %v631_v60 = vsel %vm625_vm5, %v628_v49, %v630_v50  ;;  %v695_v41 = vmax.f32 %v1175_v20, 0.0 }
 0x450   :  { %v639_v52 = vsel %vm625_vm5, %v636_v46, %v638_v48  ;;  %v1195_v58 = vmul.u32.u64.low %v640_v24, %v635_v51  ;;  %v1196_v59 = vmul.u32.u64.high %v640_v24, %v635_v51, %v1195_v58  ;;  %v647_v61 = vmul.u32 %v640_v24, %v631_v60 }
 0x451   :  { %v1192_v53 = vmul.u32.u64.low %v640_v24, %v639_v52  ;;  %v1193_v56 = vmul.u32.u64.high %v640_v24, %v639_v52, %v1192_v53 }
 0x452   :  { %v650_v10 = vadd.s32 1, %v1196_v59 }
 0x453   :  { %vm649_vm6 = vc.u32 %v1193_v56, %v1195_v58  ;;  %v648_v13 = vadd.s32 %v1195_v58, %v1193_v56 }
 0x454   :  { %v651_v62 = vsel %vm649_vm6, %v650_v10, %v1196_v59 }
 0x455   :  { %v652_v0 = vadd.s32 %v651_v62, %v647_v61 }
 0x457   :  { %v653_v1 = vadd.s32 536870912, %v652_v0 }
 0x459   :  { %v654_v2 = vshrl.u32 %v653_v1, 30 }
 0x45b   :  { %v655_v3 = vshll.u32 %v654_v2, 30  ;;  %v678_v32 = vsub.s32 4, %v654_v2 }
 0x45d   :  { %v656_v5 = vsub.s32 %v652_v0, %v655_v3  ;;  %v679_v34 = vsel %vm594_vm8, %v678_v32, %v654_v2 }
 0x45e   :  { %v681_v4 = vsel %vm593_vm9, 0, %v679_v34 }
 0x45f   :  { %v658_v6 = vsub.s32 0, %v656_v5  ;;  %v685_v35 = vand.u32 3, %v681_v4 }
 0x461   :  { %v750_v7 = vmin.u32 %v658_v6, %v656_v5  ;;  %vm690_vm10 = vcmp.eq.s32.totalorder %v685_v35, 2  ;;  %vm687_vm11 = vcmp.eq.s32.totalorder %v685_v35, 0  ;;  %vm686_vm13 = vcmp.lt.s32.totalorder %v685_v35, 2 }
 0x463   :  { %v660_v8 = vclz %v750_v7 }
 0x465   :  { %v751_v9 = vadd.s32 4294967294, %v660_v8 }
 0x467   :  { %vm752_vm7 = vcmp.lt.s32.totalorder %v751_v9, 0 }
 0x468   :  { %v663_v11 = vsel %vm752_vm7, 0, %v751_v9 }
 0x469   :  { %v664_v14 = vsub.s32 32, %v663_v11  ;;  %v668_v16 = vsub.s32 4294967266, %v663_v11  ;;  %v665_v17 = vshll.u32 %v656_v5, %v663_v11 }
 0x46b   :  { %v666_v19 = vshrl.u32 %v648_v13, %v664_v14  ;;  %v669_v22 = vadd.s32 127, %v668_v16 }
 0x46d   :  { %v667_v23 = vor.u32 %v666_v19, %v665_v17  ;;  %v670_v25 = vshll.u32 %v669_v22, 23 }
 0x46f   :  { %v671_v26 = vor.u32 4788187, %v670_v25  ;;  %v674_v29 = vcvt.s32.f32 %v667_v23 }
 0x471   :  { %v672_v28 = vand.u32 2147483647, %v671_v26 }
 0x473   :  { %v675_v31 = vmul.f32 %v674_v29, %v672_v28 }
 0x475   :  { %v676_v55 = vxor.u32 2147483648, %v675_v31 }
 0x477   :  { %v677_v57 = vsel %vm594_vm8, %v676_v55, %v675_v31 }
 0x478   :  { %v680_v33 = vsel %vm593_vm9, %v1175_v20, %v677_v57 }
 0x479   :  { %897 = vcosq.f32 %v680_v33 }
 0x47a   :  { %899 = vsinq.f32 %v680_v33 }
 0x483   :  { %v898_v36 = vpop.eup %897 }
 0x484   :  { %v900_v37 = vpop.eup %899  ;;  %v691_v38 = vxor.u32 2147483648, %v898_v36 }
 0x485   :  { %v688_v39 = vxor.u32 2147483648, %v900_v37 }
 0x486   :  { %v692_v54 = vsel %vm690_vm10, %v691_v38, %v900_v37 }
 0x487   :  { %v689_v27 = vsel %vm687_vm11, %v898_v36, %v688_v39 }
 0x488   :  { %v693_v40 = vsel %vm686_vm13, %v689_v27, %v692_v54 }
 0x489   :  { %v694_v42 = vsel %vm684_vm14, nan, %v693_v40 }
 0x48a   :  { %v698_v43 = vsel %vm52_vm12, %v694_v42, %v695_v41 }
 0x48b   :  { %699 = vst.msk [vmem:[#allocation5] sm:$0xff] %vm90_vm1, %v698_v43 }
 0x48c   :  { %934 = shalt.err (!%p931_p12)
}
 0x48d   :  { %s935_s17 = scalar_lea.hbm %s1229_s7, 128 }
 0x48e   :  { %p936_p13 = scmp.ne.s32.totalorder %s1229_s7, %s935_s17  ;;  %p939_p0 = scmp.lt.u32.totalorder %s935_s17, %s1229_s7 }
 0x490   :  { %p941_p1 = pnand %p939_p0, %p936_p13 }
 0x492   :  { %944 = shalt.err (!%p941_p1)
}
 0x493   :  { %709 = dma.vmem_to_hbm [thread:$0]  %s707_s14, 128, %s1229_s7, [#allocation4]  }
 0x494   :  { %947 = dma.done.wait [#allocation4], 128  }
 0x495   :  { %948 = vsyncadd [#allocation4], 4294967168 }
 0x496   :  { %713 = vsyncpa [#allocation3], 1 }
 0x497   :  { %714 = vsyncpa [#allocation4], 1 }

</bundles_post_ra>
